<compile_context>
chip_gen: v7x
topology: tpu7x:2x2x1
jax: 0.10.0
libtpu: 0.0.40
codegen_flags: <defaults>
</compile_context>

<pallas_src>
import functools

import jax
import jax.numpy as jnp
from jax.experimental import pallas as pl
from jax.experimental.pallas import tpu as pltpu


def _round_up(x, m):
    return ((x + m - 1) // m) * m


def _mlp_head_kernel(num_layers, x_ref, w_ref, b_ref, o_ref):
    """One batch tile through the whole MLP + final tanh.

    x_ref: (TM, D_PAD)           f32 lane-dense batch tile
    w_ref: (L, D_PAD, D_PAD)     f32 packed, zero-padded weights (VMEM resident)
    b_ref: (L, 1, D_PAD)         f32 packed, zero-padded biases  (VMEM resident)
    o_ref: (TM, D_PAD)           f32 lane-dense output tile
    """
    h = x_ref[...]
    for i in range(num_layers):  # static unroll: num_layers is small
        # MXU matmul with f32 accumulation + VPU bias add.
        h = jnp.dot(h, w_ref[i], preferred_element_type=jnp.float32) + b_ref[i]
    # last_act: tanh (EUP transcendental), lane-dense unmasked store.
    o_ref[...] = jnp.tanh(h)


def mlp_head_forward(x, weights, biases, *, max_tile_m=512):
    """MLPHead forward in a single pallas_call.

    x:       (B, in_features) f32
    weights: list of (d_in, d_out) f32 arrays (already transposed vs. torch)
    biases:  list of (1, d_out)    f32 arrays
    Returns activated output; mirrors the PyTorch module's `X.squeeze()` when
    out_features == 1.
    """
    num_layers = len(weights)
    B, in_features = x.shape
    out_features = int(weights[-1].shape[-1])

    layer_dims = [in_features] + [int(w.shape[-1]) for w in weights]
    d_pad = _round_up(max(layer_dims), 128)  # every feature dim -> lane multiple

    # ---- pack parameters into 2 padded operands (done once; in a real model
    # this packing would be precomputed, not redone per forward) -------------
    w_packed = jnp.zeros((num_layers, d_pad, d_pad), jnp.float32)
    b_packed = jnp.zeros((num_layers, 1, d_pad), jnp.float32)
    for i, (w, b) in enumerate(zip(weights, biases)):
        d_in, d_out = int(w.shape[0]), int(w.shape[1])
        w_packed = w_packed.at[i, :d_in, :d_out].set(w.astype(jnp.float32))
        b_packed = b_packed.at[i, 0, :d_out].set(
            jnp.reshape(b, (d_out,)).astype(jnp.float32))

    # ---- batch tiling: sublane-pad batch, lane-pad features -----------------
    tm = min(max_tile_m, _round_up(B, 8))
    b_pad = _round_up(B, tm)
    x_p = jnp.zeros((b_pad, d_pad), jnp.float32).at[:B, :in_features].set(
        x.astype(jnp.float32))

    grid = (b_pad // tm,)

    flops = 2 * B * sum(di * do for di, do in zip(layer_dims, layer_dims[1:]))
    bytes_accessed = 4 * (x_p.size + w_packed.size + b_packed.size + b_pad * d_pad)
    cost = pl.CostEstimate(
        flops=flops,
        transcendentals=B * out_features,
        bytes_accessed=bytes_accessed,
    )

    out = pl.pallas_call(
        functools.partial(_mlp_head_kernel, num_layers),
        out_shape=jax.ShapeDtypeStruct((b_pad, d_pad), jnp.float32),
        grid=grid,
        in_specs=[
            # batch tile of x
            pl.BlockSpec((tm, d_pad), lambda i: (i, 0)),
            # packed weights: constant block index -> DMA'd once, VMEM-resident
            pl.BlockSpec((num_layers, d_pad, d_pad), lambda i: (0, 0, 0)),
            # packed biases: constant block index -> DMA'd once, VMEM-resident
            pl.BlockSpec((num_layers, 1, d_pad), lambda i: (0, 0, 0)),
        ],
        out_specs=pl.BlockSpec((tm, d_pad), lambda i: (i, 0)),
        compiler_params=pltpu.CompilerParams(
            dimension_semantics=("parallel",)),  # megacore sharding on v7x
        cost_estimate=cost,
    )(x_p, w_packed, b_packed)

    # Drop batch/feature padding back to the true shape.
    out = out[:B, :out_features]
    if out.shape[-1] == 1:
        # Mirrors torch's `X.squeeze()` exactly (drops ALL size-1 dims),
        # including collapsing a size-1 batch dim when B == 1.
        out = jnp.squeeze(out)
    return out


def init_params(key, layer_dims):
    """Deterministic init mimicking nn.Linear's uniform(-1/sqrt(fan_in), ...)."""
    weights, biases = [], []
    for d_in, d_out in zip(layer_dims, layer_dims[1:]):
        key, kw, kb = jax.random.split(key, 3)
        bound = 1.0 / jnp.sqrt(jnp.float32(d_in))
        w = jax.random.uniform(kw, (d_in, d_out), jnp.float32, -bound, bound)
        b = jax.random.uniform(kb, (1, d_out), jnp.float32, -bound, bound)
        weights.append(w)
        biases.append(b)
    return weights, biases


if __name__ == "__main__":
    # params: in_features=32, hidden_layers=(64, 32), out_features=1,
    #         last_act = tanh
    in_features = 32
    hidden_layers = (64, 32)
    out_features = 1
    layer_dims = [in_features] + list(hidden_layers) + [out_features]

    key = jax.random.PRNGKey(0)
    key, kx = jax.random.split(key)
    B = 8
    x = jax.random.normal(kx, (B, in_features), jnp.float32)

    weights, biases = init_params(key, layer_dims)

    out = mlp_head_forward(x, weights, biases)
    out = jax.block_until_ready(out)

    # Pure-JAX reference for sanity.
    ref = x
    for w, b in zip(weights, biases):
        ref = ref @ w + b
    ref = jnp.tanh(ref)
    if ref.shape[-1] == 1:
        ref = jnp.squeeze(ref)
    assert out.shape == ref.shape == (B,), (out.shape, ref.shape)
    assert jnp.allclose(out, ref, atol=1e-5, rtol=1e-5)

    print("KERNEL_OK")
</pallas_src>

<mosaic_0001>
module attributes {stable_mosaic.version = 11 : i64} {
  func.func @_mlp_head_kernel(%arg0: i32, %arg1: memref<8x128xf32, #tpu.memory_space<vmem>>, %arg2: memref<3x128x128xf32, #tpu.memory_space<vmem>>, %arg3: memref<3x1x128xf32, #tpu.memory_space<vmem>>, %arg4: memref<8x128xf32, #tpu.memory_space<vmem>>) attributes {dimension_semantics = [#tpu.dimension_semantics<parallel>], iteration_bounds = array<i64: 1>, scalar_prefetch = 0 : i64, scratch_operands = 0 : i64, tpu.core_type = #tpu.core_type<tc>, window_params = [{transform_indices = @transform_0, window_bounds = array<i64: 8, 128>}, {pipeline_mode = #tpu.pipeline_mode<synchronous>, transform_indices = @transform_1, window_bounds = array<i64: 3, 128, 128>}, {pipeline_mode = #tpu.pipeline_mode<synchronous>, transform_indices = @transform_2, window_bounds = array<i64: 3, 1, 128>}, {transform_indices = @transform_3, window_bounds = array<i64: 8, 128>}]} {
    %c0 = arith.constant 0 : index
    %c0_0 = arith.constant 0 : index
    %0 = vector.load %arg1[%c0, %c0_0] : memref<8x128xf32, #tpu.memory_space<vmem>>, vector<8x128xf32>
    %c0_1 = arith.constant 0 : index
    %c0_2 = arith.constant 0 : index
    %c0_3 = arith.constant 0 : index
    %1 = vector.load %arg2[%c0_1, %c0_2, %c0_3] : memref<3x128x128xf32, #tpu.memory_space<vmem>>, vector<1x128x128xf32>
    %2 = vector.shape_cast %1 : vector<1x128x128xf32> to vector<128x128xf32>
    %cst = arith.constant dense<0.000000e+00> : vector<8x128xf32>
    %3 = tpu.matmul %0, %2, %cst {dimension_numbers = #tpu.dot_dimension_numbers<[1], [0], [0], [1], [0, 0, 1, 1], [], []>} : vector<8x128xf32>, vector<128x128xf32>, vector<8x128xf32> -> vector<8x128xf32>
    %c0_4 = arith.constant 0 : index
    %c0_5 = arith.constant 0 : index
    %c0_6 = arith.constant 0 : index
    %4 = vector.load %arg3[%c0_4, %c0_5, %c0_6] : memref<3x1x128xf32, #tpu.memory_space<vmem>>, vector<1x1x128xf32>
    %5 = vector.shape_cast %4 : vector<1x1x128xf32> to vector<1x128xf32>
    %6 = vector.broadcast %5 : vector<1x128xf32> to vector<8x128xf32>
    %7 = arith.addf %3, %6 : vector<8x128xf32>
    %c1 = arith.constant 1 : index
    %c0_7 = arith.constant 0 : index
    %c0_8 = arith.constant 0 : index
    %8 = vector.load %arg2[%c1, %c0_7, %c0_8] : memref<3x128x128xf32, #tpu.memory_space<vmem>>, vector<1x128x128xf32>
    %9 = vector.shape_cast %8 : vector<1x128x128xf32> to vector<128x128xf32>
    %cst_9 = arith.constant dense<0.000000e+00> : vector<8x128xf32>
    %10 = tpu.matmul %7, %9, %cst_9 {dimension_numbers = #tpu.dot_dimension_numbers<[1], [0], [0], [1], [0, 0, 1, 1], [], []>} : vector<8x128xf32>, vector<128x128xf32>, vector<8x128xf32> -> vector<8x128xf32>
    %c1_10 = arith.constant 1 : index
    %c0_11 = arith.constant 0 : index
    %c0_12 = arith.constant 0 : index
    %11 = vector.load %arg3[%c1_10, %c0_11, %c0_12] : memref<3x1x128xf32, #tpu.memory_space<vmem>>, vector<1x1x128xf32>
    %12 = vector.shape_cast %11 : vector<1x1x128xf32> to vector<1x128xf32>
    %13 = vector.broadcast %12 : vector<1x128xf32> to vector<8x128xf32>
    %14 = arith.addf %10, %13 : vector<8x128xf32>
    %c2 = arith.constant 2 : index
    %c0_13 = arith.constant 0 : index
    %c0_14 = arith.constant 0 : index
    %15 = vector.load %arg2[%c2, %c0_13, %c0_14] : memref<3x128x128xf32, #tpu.memory_space<vmem>>, vector<1x128x128xf32>
    %16 = vector.shape_cast %15 : vector<1x128x128xf32> to vector<128x128xf32>
    %cst_15 = arith.constant dense<0.000000e+00> : vector<8x128xf32>
    %17 = tpu.matmul %14, %16, %cst_15 {dimension_numbers = #tpu.dot_dimension_numbers<[1], [0], [0], [1], [0, 0, 1, 1], [], []>} : vector<8x128xf32>, vector<128x128xf32>, vector<8x128xf32> -> vector<8x128xf32>
    %c2_16 = arith.constant 2 : index
    %c0_17 = arith.constant 0 : index
    %c0_18 = arith.constant 0 : index
    %18 = vector.load %arg3[%c2_16, %c0_17, %c0_18] : memref<3x1x128xf32, #tpu.memory_space<vmem>>, vector<1x1x128xf32>
    %19 = vector.shape_cast %18 : vector<1x1x128xf32> to vector<1x128xf32>
    %20 = vector.broadcast %19 : vector<1x128xf32> to vector<8x128xf32>
    %21 = arith.addf %17, %20 : vector<8x128xf32>
    %22 = math.tanh %21 : vector<8x128xf32>
    %c0_19 = arith.constant 0 : index
    %c0_20 = arith.constant 0 : index
    %23 = vector.load %arg4[%c0_19, %c0_20] : memref<8x128xf32, #tpu.memory_space<vmem>>, vector<8x128xf32>
    tpu.vector_store %arg4[%c0_19, %c0_20], %22 {strides = array<i32>} : memref<8x128xf32, #tpu.memory_space<vmem>>, vector<8x128xf32>,
    return
  }
  func.func @transform_0(%arg0: i32) -> (i32, i32) {
    %c0_i32 = arith.constant 0 : i32
    %c0_i32_0 = arith.constant 0 : i32
    return %arg0, %c0_i32 : i32, i32
  }
  func.func @transform_1(%arg0: i32) -> (i32, i32, i32) {
    %c0_i32 = arith.constant 0 : i32
    %c0_i32_0 = arith.constant 0 : i32
    %c0_i32_1 = arith.constant 0 : i32
    %c0_i32_2 = arith.constant 0 : i32
    return %c0_i32, %c0_i32_0, %c0_i32_1 : i32, i32, i32
  }
  func.func @transform_2(%arg0: i32) -> (i32, i32, i32) {
    %c0_i32 = arith.constant 0 : i32
    %c0_i32_0 = arith.constant 0 : i32
    %c0_i32_1 = arith.constant 0 : i32
    %c0_i32_2 = arith.constant 0 : i32
    return %c0_i32, %c0_i32_0, %c0_i32_1 : i32, i32, i32
  }
  func.func @transform_3(%arg0: i32) -> (i32, i32) {
    %c0_i32 = arith.constant 0 : i32
    %c0_i32_0 = arith.constant 0 : i32
    return %arg0, %c0_i32 : i32, i32
  }
}

</mosaic_0001>

<bundles_post_ra>
// kernel: tpu_custom_call.1
= control target key start
LH: loop header
LB: loop body
LE: loop exit
PB: predicated region body
PF: predicated region fallthrough
CT: control target
= control target key end

     0   :  { %8 = vsyncpa [#allocation3], 0  ;;  %s768_s0 = inlined_call_operand.hbm [shape: f32[8,128], index: 0, kind: input, shape index: {}]   ;;  %s769_s1 = inlined_call_operand.hbm [shape: f32[3,128,128], index: 1, kind: input, shape index: {}]   ;;  %s770_s2 = inlined_call_operand.vmem [shape: f32[3,1,128], index: 2, kind: input, shape index: {}]   ;;  %s771_s3 = inlined_call_operand.hbm [shape: f32[8,128], index: 3, kind: output, shape index: {}]  }
   0x1   :  { %9 = vsyncpa [#allocation6], 0 }
   0x2   :  { %10 = vsyncpa [#allocation4], 0  ;;  %s658_s12 = smov [#allocation2]   ;;  %s659_s14 = smov [#allocation5]  }
   0x3   :  { %s17_s13 = sshll.u32 %s658_s12, 4  ;;  %s26_s15 = sshll.u32 %s659_s14, 4  ;;  %s18_s13 = int_to_ptr.vmem [resolvable:$true] %s17_s13  ;;  %s686_s15 = int_to_ptr.vmem [resolvable:$true] %s26_s15 }
   0x4   :  { %s586_s18 = scalar_lea.hbm %s768_s0, 128 }
   0x5   :  { %p587_p0 = scmp.ne.s32.totalorder %s768_s0, %s586_s18  ;;  %p590_p1 = scmp.lt.u32.totalorder %s586_s18, %s768_s0 }
   0x7   :  { %p592_p2 = pnand %p590_p1, %p587_p0 }
   0x9   :  { %595 = shalt.err (!%p592_p2)
}
   0xa   :  { %s596_s23 = scalar_lea.vmem %s18_s13, 128  ;;  %p601_p4 = scmp.lt.s32.totalorder %s18_s13, %s18_s13 }
   0xb   :  { %p597_p3 = scmp.ne.s32.totalorder %s18_s13, %s596_s23  ;;  %p602_p5 = scmp.lt.s32.totalorder %s596_s23, %s596_s23 }
   0xd   :  { %p603_p6 = por %p602_p5, %p601_p4 }
   0xf   :  { %p604_p7 = pnand %p603_p6, %p597_p3 }
  0x11   :  { %607 = shalt.err (!%p604_p7)
}
  0x12   :  { %20 = dma.hbm_to_vmem [thread:$0]  %s768_s0, 128, %s18_s13, [#allocation3]  }
  0x13   :  { %s608_s28 = scalar_lea.hbm %s769_s1, 6144 }
  0x14   :  { %p609_p8 = scmp.ne.s32.totalorder %s769_s1, %s608_s28  ;;  %p612_p9 = scmp.lt.u32.totalorder %s608_s28, %s769_s1 }
  0x16   :  { %p614_p10 = pnand %p612_p9, %p609_p8 }
  0x18   :  { %617 = shalt.err (!%p614_p10)
}
  0x19   :  { %s618_s6 = scalar_lea.vmem %s686_s15, 6144  ;;  %p623_p12 = scmp.lt.s32.totalorder %s686_s15, %s686_s15 }
  0x1a   :  { %p619_p11 = scmp.ne.s32.totalorder %s686_s15, %s618_s6  ;;  %p624_p13 = scmp.lt.s32.totalorder %s618_s6, %s618_s6 }
  0x1c   :  { %p625_p0 = por %p624_p13, %p623_p12 }
  0x1e   :  { %p626_p1 = pnand %p625_p0, %p619_p11 }
  0x20   :  { %629 = shalt.err (!%p626_p1)
}
  0x21   :  { %s660_s0 = smov 128   ;;  %s661_s7 = smov 8  }
  0x22   :  { %32 = dma.hbm_to_vmem [thread:$0]  %s769_s1, 6144, %s686_s15, [#allocation6], %s660_s0, %s660_s0, %s661_s7  }
  0x23   :  { %652 = dma.done.wait [#allocation3], 128  }
  0x24   :  { %653 = vsyncadd [#allocation3], 4294967168 }
  0x25   :  { %654 = dma.done.wait [#allocation6], 6144  }
  0x26   :  { %655 = vsyncadd [#allocation6], 4294961152  ;;  %v662_v0 = vmov 0.0|0.0   ;;  %vm663_vm0 = vmmov 0   ;;  %v664_v1 = vmov 0.0   ;;  %v42_v2 = vld [vmem:[#allocation5] sm:$0xff] }
  0x27   :  { %504 = vmatprep.subr.bf16.mxu0 %v662_v0  ;;  %431 = vmatprep.mubr.msk.f32.mxu0 %vm663_vm0, %v664_v1  ;;  %v43_v3 = vld [vmem:[#allocation5 + $0x8] sm:$0xff]  ;;  %v44_v4 = vld [vmem:[#allocation5 + $0x10] sm:$0xff]  ;;  %v45_v6 = vld [vmem:[#allocation5 + $0x18] sm:$0xff]  ;;  %s665_s15 = smov [#allocation7]  }
  0x28   :  { %528 = vmatprep.subr.bf16.mxu1 %v662_v0  ;;  %466 = vmatprep.mubr.msk.f32.mxu1 %vm663_vm0, %v664_v1  ;;  %v505_v5 = vpack.c.bf16 %v43_v3, %v42_v2  ;;  %v508_v7 = vpack.c.bf16 %v45_v6, %v44_v4  ;;  %v46_v8 = vld [vmem:[#allocation5 + $0x20] sm:$0xff]  ;;  %v47_v9 = vld [vmem:[#allocation5 + $0x28] sm:$0xff]  ;;  %v138_v12 = vld [vmem:[#allocation5 + $0x90] sm:$0xff]  ;;  %s333_s16 = sshll.u32 %s665_s15, 4  ;;  %s334_s16 = int_to_ptr.vmem [resolvable:$true] %s333_s16 }
  0x29   :  { %v136_v10 = vld [vmem:[#allocation5 + $0x80] sm:$0xff]  ;;  %v137_v11 = vld [vmem:[#allocation5 + $0x88] sm:$0xff]  ;;  %v139_v13 = vld [vmem:[#allocation5 + $0x98] sm:$0xff]  ;;  %v511_v14 = vpack.c.bf16 %v47_v9, %v46_v8  ;;  %s630_s17 = scalar_lea.vmem %s334_s16, 128  ;;  %p635_p3 = scmp.lt.s32.totalorder %s334_s16, %s334_s16 }
  0x2a   :  { %506 = vmatpush3.bf16.msra.mxu0 %v505_v5  ;;  %v529_v15 = vpack.c.bf16 %v137_v11, %v136_v10  ;;  %v48_v16 = vld [vmem:[#allocation5 + $0x30] sm:$0xff]  ;;  %v49_v17 = vld [vmem:[#allocation5 + $0x38] sm:$0xff]  ;;  %v532_v18 = vpack.c.bf16 %v139_v13, %v138_v12  ;;  %v140_v19 = vld [vmem:[#allocation5 + $0xa0] sm:$0xff]  ;;  %p631_p2 = scmp.ne.s32.totalorder %s334_s16, %s630_s17  ;;  %p636_p4 = scmp.lt.s32.totalorder %s630_s17, %s630_s17 }
  0x2b   :  { %507 = vmatprep.subr.bf16.mxu0 %v662_v0  ;;  %v141_v20 = vld [vmem:[#allocation5 + $0xa8] sm:$0xff]  ;;  %v514_v21 = vpack.c.bf16 %v49_v17, %v48_v16  ;;  %v50_v22 = vld [vmem:[#allocation5 + $0x40] sm:$0xff]  ;;  %v142_v25 = vld [vmem:[#allocation5 + $0xb0] sm:$0xff] }
  0x2c   :  { %530 = vmatpush3.bf16.msra.mxu1 %v529_v15  ;;  %v51_v23 = vld [vmem:[#allocation5 + $0x48] sm:$0xff]  ;;  %v535_v24 = vpack.c.bf16 %v141_v20, %v140_v19  ;;  %v143_v26 = vld [vmem:[#allocation5 + $0xb8] sm:$0xff]  ;;  %v52_v28 = vld [vmem:[#allocation5 + $0x50] sm:$0xff]  ;;  %p637_p5 = por %p636_p4, %p635_p3 }
  0x2d   :  { %531 = vmatprep.subr.bf16.mxu1 %v662_v0  ;;  %v517_v27 = vpack.c.bf16 %v51_v23, %v50_v22  ;;  %v53_v29 = vld [vmem:[#allocation5 + $0x58] sm:$0xff]  ;;  %v538_v30 = vpack.c.bf16 %v143_v26, %v142_v25  ;;  %v144_v31 = vld [vmem:[#allocation5 + $0xc0] sm:$0xff]  ;;  %v145_v32 = vld [vmem:[#allocation5 + $0xc8] sm:$0xff] }
  0x2e   :  { %509 = vmatpush3.bf16.msra.mxu0 %v508_v7  ;;  %v520_v33 = vpack.c.bf16 %v53_v29, %v52_v28  ;;  %v54_v34 = vld [vmem:[#allocation5 + $0x60] sm:$0xff]  ;;  %v55_v35 = vld [vmem:[#allocation5 + $0x68] sm:$0xff]  ;;  %v541_v36 = vpack.c.bf16 %v145_v32, %v144_v31  ;;  %v146_v37 = vld [vmem:[#allocation5 + $0xd0] sm:$0xff]  ;;  %p638_p6 = pnand %p637_p5, %p631_p2 }
  0x2f   :  { %510 = vmatprep.subr.bf16.mxu0 %v662_v0  ;;  %v147_v38 = vld [vmem:[#allocation5 + $0xd8] sm:$0xff]  ;;  %v523_v39 = vpack.c.bf16 %v55_v35, %v54_v34  ;;  %v56_v40 = vld [vmem:[#allocation5 + $0x70] sm:$0xff]  ;;  %v148_v43 = vld [vmem:[#allocation5 + $0xe0] sm:$0xff] }
  0x30   :  { %533 = vmatpush3.bf16.msra.mxu1 %v532_v18  ;;  %v57_v41 = vld [vmem:[#allocation5 + $0x78] sm:$0xff]  ;;  %v544_v42 = vpack.c.bf16 %v147_v38, %v146_v37  ;;  %v149_v44 = vld [vmem:[#allocation5 + $0xe8] sm:$0xff]  ;;  %v150_v48 = vld [vmem:[#allocation5 + $0xf0] sm:$0xff] }
  0x31   :  { %534 = vmatprep.subr.bf16.mxu1 %v662_v0  ;;  %v526_v45 = vpack.c.bf16 %v57_v41, %v56_v40  ;;  %v547_v46 = vpack.c.bf16 %v149_v44, %v148_v43  ;;  %v41_v47 = vld [vmem:[#allocation2] sm:$0xff]  ;;  %v231_v51 = vld [vmem:[#allocation5 + $0x100] sm:$0xff]  ;;  %v232_v52 = vld [vmem:[#allocation5 + $0x108] sm:$0xff] }
  0x32   :  { %512 = vmatpush3.bf16.msra.mxu0 %v511_v14  ;;  %v151_v49 = vld [vmem:[#allocation5 + $0xf8] sm:$0xff]  ;;  %v233_v53 = vld [vmem:[#allocation5 + $0x110] sm:$0xff]  ;;  %v553_v54 = vpack.c.bf16 %v232_v52, %v231_v51  ;;  %v235_v57 = vld [vmem:[#allocation5 + $0x120] sm:$0xff] }
  0x33   :  { %513 = vmatprep.subr.bf16.mxu0 %v662_v0  ;;  %v550_v50 = vpack.c.bf16 %v151_v49, %v150_v48  ;;  %v234_v55 = vld [vmem:[#allocation5 + $0x118] sm:$0xff]  ;;  %v236_v58 = vld [vmem:[#allocation5 + $0x128] sm:$0xff]  ;;  %v237_v60 = vld [vmem:[#allocation5 + $0x130] sm:$0xff] }
  0x34   :  { %536 = vmatpush3.bf16.msra.mxu1 %v535_v24  ;;  %v556_v56 = vpack.c.bf16 %v234_v55, %v233_v53  ;;  %v559_v59 = vpack.c.bf16 %v236_v58, %v235_v57  ;;  %v238_v61 = vld [vmem:[#allocation5 + $0x138] sm:$0xff]  ;;  %v239_v63 = vld [vmem:[#allocation5 + $0x140] sm:$0xff]  ;;  %v241_v3 = vld [vmem:[#allocation5 + $0x150] sm:$0xff] }
  0x35   :  { %537 = vmatprep.subr.bf16.mxu1 %v662_v0  ;;  %v562_v62 = vpack.c.bf16 %v238_v61, %v237_v60  ;;  %v242_v4 = vld [vmem:[#allocation5 + $0x158] sm:$0xff]  ;;  %v243_v6 = vld [vmem:[#allocation5 + $0x160] sm:$0xff]  ;;  %v244_v7 = vld [vmem:[#allocation5 + $0x168] sm:$0xff] }
  0x36   :  { %515 = vmatpush3.bf16.msra.mxu0 %v514_v21  ;;  %v568_v5 = vpack.c.bf16 %v242_v4, %v241_v3  ;;  %v571_v8 = vpack.c.bf16 %v244_v7, %v243_v6  ;;  %v343_v9 = vld [vmem:[%s770_s2] ss:$0 sm:$0xff]  ;;  %v245_v13 = vld [vmem:[#allocation5 + $0x170] sm:$0xff]  ;;  %v345_v16 = vld [vmem:[%s770_s2 + $0x1] ss:$0 sm:$0xff] }
  0x37   :  { %516 = vmatprep.subr.bf16.mxu0 %v662_v0  ;;  %v246_v14 = vld [vmem:[#allocation5 + $0x178] sm:$0xff] }
  0x38   :  { %539 = vmatpush3.bf16.msra.mxu1 %v538_v30  ;;  %v574_v15 = vpack.c.bf16 %v246_v14, %v245_v13 }
  0x39   :  { %540 = vmatprep.subr.bf16.mxu1 %v662_v0 }
  0x3a   :  { %518 = vmatpush3.bf16.msra.mxu0 %v517_v27 }
  0x3b   :  { %519 = vmatprep.subr.bf16.mxu0 %v662_v0 }
  0x3c   :  { %542 = vmatpush3.bf16.msra.mxu1 %v541_v36 }
  0x3d   :  { %543 = vmatprep.subr.bf16.mxu1 %v662_v0 }
  0x3e   :  { %521 = vmatpush3.bf16.msra.mxu0 %v520_v33 }
  0x3f   :  { %522 = vmatprep.subr.bf16.mxu0 %v662_v0 }
  0x40   :  { %545 = vmatpush3.bf16.msra.mxu1 %v544_v42 }
  0x41   :  { %546 = vmatprep.subr.bf16.mxu1 %v662_v0 }
  0x42   :  { %524 = vmatpush3.bf16.msra.mxu0 %v523_v39 }
  0x43   :  { %525 = vmatprep.subr.bf16.mxu0 %v662_v0 }
  0x44   :  { %548 = vmatpush3.bf16.msra.mxu1 %v547_v46 }
  0x45   :  { %549 = vmatprep.subr.bf16.mxu1 %v662_v0 }
  0x46   :  { %527 = vmatpush3.bf16.msra.mxu0 %v526_v45 }
  0x47   :  { %552 = vmatprep.subr.bf16.mxu0 %v662_v0 }
  0x48   :  { %551 = vmatpush3.bf16.msra.mxu1 %v550_v50 }
  0x49   :  { %432 = vmatmul.mubr.f32.vlgmr.msra.gmra.mrb[0].mxu0 %v41_v47 }
  0x4a   :  { %501 = vmatprep.mubr.msk.f32.mxu0 %vm663_vm0, %v664_v1  ;;  %554 = vmatpush3.bf16.msra.mxu0 %v553_v54  ;;  %v240_v1 = vld [vmem:[#allocation5 + $0x148] sm:$0xff] }
  0x4b   :  { %555 = vmatprep.subr.bf16.mxu0 %v662_v0  ;;  %v565_v2 = vpack.c.bf16 %v240_v1, %v239_v63 }
  0x4e   :  { %557 = vmatpush3.bf16.msra.mxu0 %v556_v56 }
  0x4f   :  { %558 = vmatprep.subr.bf16.mxu0 %v662_v0 }
  0x52   :  { %560 = vmatpush3.bf16.msra.mxu0 %v559_v59 }
  0x53   :  { %561 = vmatprep.subr.bf16.mxu0 %v662_v0 }
  0x56   :  { %563 = vmatpush3.bf16.msra.mxu0 %v562_v62 }
  0x57   :  { %564 = vmatprep.subr.bf16.mxu0 %v662_v0 }
  0x5a   :  { %566 = vmatpush3.bf16.msra.mxu0 %v565_v2 }
  0x5b   :  { %567 = vmatprep.subr.bf16.mxu0 %v662_v0 }
  0x5e   :  { %569 = vmatpush3.bf16.msra.mxu0 %v568_v5 }
  0x5f   :  { %570 = vmatprep.subr.bf16.mxu0 %v662_v0 }
  0x62   :  { %572 = vmatpush3.bf16.msra.mxu0 %v571_v8 }
  0x63   :  { %573 = vmatprep.subr.bf16.mxu0 %v662_v0  ;;  %v347_v0 = vld [vmem:[%s770_s2 + $0x2] ss:$0 sm:$0xff] }
  0x66   :  { %575 = vmatpush3.bf16.msra.mxu0 %v574_v15 }
 0x11c   :  { %v131_v10 = vpop.f32.mrb[0].mxu0 }
 0x11d   :  { %v132_v11 = vadd.f32 %v343_v9, %v131_v10  ;;  %v433_v12 = vpop.f32.mrb[1].mxu0 }
 0x11f   :  { %467 = vmatmul.mubr.f32.vlgmr.msra.gmra.mrb[0].mxu1 %v132_v11 }
 0x1f2   :  { %v226_v17 = vpop.f32.mrb[0].mxu1 }
 0x1f3   :  { %v227_v18 = vadd.f32 %v345_v16, %v226_v17  ;;  %v468_v19 = vpop.f32.mrb[1].mxu1 }
 0x1f5   :  { %502 = vmatmul.mubr.f32.vlgmr.msra.gmra.mrb[2].mxu0 %v227_v18 }
 0x2c8   :  { %v321_v20 = vpop.f32.mrb[2].mxu0 }
 0x2c9   :  { %v322_v21 = vadd.f32 %v347_v0, %v321_v20  ;;  %v503_v22 = vpop.f32.mrb[3].mxu0 }
 0x2cb   :  { %584 = vtanh.f32 %v322_v21 }
 0x2d5   :  { %v585_v23 = vpop.eup %584 }
 0x2d6   :  { %326 = vst [vmem:[#allocation7] sm:$0xff] %v585_v23 }
 0x2d7   :  { %641 = shalt.err (!%p638_p6)
}
 0x2d8   :  { %s642_s2 = scalar_lea.hbm %s771_s3, 128 }
 0x2d9   :  { %p643_p7 = scmp.ne.s32.totalorder %s771_s3, %s642_s2  ;;  %p646_p8 = scmp.lt.u32.totalorder %s642_s2, %s771_s3 }
 0x2db   :  { %p648_p9 = pnand %p646_p8, %p643_p7 }
 0x2dd   :  { %651 = shalt.err (!%p648_p9)
}
 0x2de   :  { %336 = dma.vmem_to_hbm [thread:$0]  %s334_s16, 128, %s771_s3, [#allocation4]  }
 0x2df   :  { %656 = dma.done.wait [#allocation4], 128  }
 0x2e0   :  { %657 = vsyncadd [#allocation4], 4294967168 }
 0x2e1   :  { %340 = vsyncpa [#allocation3], 1 }
 0x2e2   :  { %341 = vsyncpa [#allocation6], 1 }
 0x2e3   :  { %342 = vsyncpa [#allocation4], 1 }

</bundles_post_ra>
